<compile_context>
chip_gen: v7x
topology: tpu7x:2x2x1
jax: 0.10.0
libtpu: 0.0.40
codegen_flags: <defaults>
</compile_context>

<pallas_src>
import jax
import jax.numpy as jnp
from jax import lax
from jax.experimental import pallas as pl
from jax.experimental.pallas import tpu as pltpu

EPS = 1e-5


# ------------------------------ Pallas kernel --------------------------------
def _make_fused_kernel(rows, H, W, cb):
    WC = W * cb

    def kernel(x1_ref, x2_ref, w1_ref, dwt_ref, w3_ref, b_ref, o_ref):
        biases = b_ref[...]                       # (2, 2*WC)
        b1t = biases[0, :WC][None, :]             # (1, WC)   folded BN1 bias (W-tiled)
        bct = biases[1][None, :]                  # (1, 2*WC) folded BN2/BN3 bias (shuffled)

        # ---- 1x1 conv #1 (BN1 scale folded into block-diag weight) + ReLU ----
        h = jnp.dot(x2_ref[...], w1_ref[...],
                    preferred_element_type=jnp.float32) + b1t
        h = jnp.maximum(h, 0.0)                   # (rows, WC)

        zero = jnp.zeros_like(h)
        lane = lax.broadcasted_iota(jnp.int32, (rows, WC), 1)
        rmod = lax.broadcasted_iota(jnp.int32, (rows, WC), 0) % H

        # ---- depthwise 3x3, stride 1, pad 1 (BN2 scale folded into taps) ----
        # W-direction taps: one-pixel lane rotation (cb lanes) + border mask.
        left = jnp.where(lane >= cb, pltpu.roll(h, cb, axis=1), zero)            # reads w-1
        right = jnp.where(lane < WC - cb, pltpu.roll(h, WC - cb, axis=1), zero)  # reads w+1

        # H-direction taps: sublane pad + slice with per-image row masks, so no
        # cross-image leakage regardless of how many images share this block.
        not_top = rmod != 0
        not_bot = rmod != (H - 1)
        dwt = dwt_ref[...]                        # (3, 3, WC) pre-tiled taps

        acc = None
        for kx, p in enumerate((left, h, right)):        # kx -> reads w + kx - 1
            padded = jnp.pad(p, ((1, 1), (0, 0)))        # (rows + 2, WC)
            taps = (jnp.where(not_top, padded[:-2, :], zero),   # reads h - 1
                    p,                                          # reads h
                    jnp.where(not_bot, padded[2:, :], zero))    # reads h + 1
            for ky in range(3):
                term = taps[ky] * dwt[ky, kx][None, :]
                acc = term if acc is None else acc + term       # (rows, WC)

        # ---- fused: x1 passthrough + 1x1 conv #2 (+BN3, b2 folded) + concat
        #      + channel shuffle (groups=2) + ReLU on the branch2 half ----
        z = (jnp.dot(x1_ref[...], w3_ref[0], preferred_element_type=jnp.float32)
             + jnp.dot(acc, w3_ref[1], preferred_element_type=jnp.float32)
             + bct)                               # (rows, 2*WC), shuffled order
        olane = lax.broadcasted_iota(jnp.int32, z.shape, 1)
        o_ref[...] = jnp.where((olane & 1) == 1, jnp.maximum(z, 0.0), z)

    return kernel


def _pick_images_per_block(B, H):
    """Images per grid step: keep >= 2 grid steps when possible (v7x megacore,
    both TCs) while targeting <= ~256 rows per MXU call; fall back to the whole
    batch in a single block when per-image blocks can't satisfy (8,128) tiling."""
    if B == 1 or H % 8 != 0:
        return B
    g = max(1, min(B // 2, max(1, 256 // H)))
    while B % g != 0:
        g -= 1
    return g


def fused_unit_pallas(x1, x2, w1big, dwt, w3big, biases, *, B, H, W, cb):
    BH, WC = B * H, W * cb
    g = _pick_images_per_block(B, H)             # images per grid step
    rows = g * H
    nblk = B // g
    kernel = _make_fused_kernel(rows, H, W, cb)

    return pl.pallas_call(
        kernel,
        out_shape=jax.ShapeDtypeStruct((BH, 2 * WC), jnp.float32),
        grid_spec=pltpu.PrefetchScalarGridSpec(
            num_scalar_prefetch=0,
            grid=(nblk,),
            in_specs=[
                pl.BlockSpec((rows, WC), lambda i: (i, 0)),            # x1
                pl.BlockSpec((rows, WC), lambda i: (i, 0)),            # x2
                pl.BlockSpec((WC, WC), lambda i: (0, 0)),              # w1big
                pl.BlockSpec((3, 3, WC), lambda i: (0, 0, 0)),         # dw taps
                pl.BlockSpec((2, WC, 2 * WC), lambda i: (0, 0, 0)),    # w3big
                pl.BlockSpec((2, 2 * WC), lambda i: (0, 0)),           # biases
            ],
            out_specs=pl.BlockSpec((rows, 2 * WC), lambda i: (i, 0)),
        ),
        compiler_params=pltpu.CompilerParams(
            dimension_semantics=("parallel",)),
    )(x1, x2, w1big, dwt, w3big, biases)


# ------------------------------ param folding --------------------------------
def _fold_bn(gamma, beta, mean, var):
    scale = gamma / jnp.sqrt(var + EPS)
    bias = beta - mean * scale
    return scale, bias


def prepare_fused_params(params, H, W):
    """Fold BN into the conv weights, fuse channel shuffle into the last 1x1
    conv, and lay everything out for the lane-dense (rows, W*cb) layout."""
    w1, s1, b1, dw, s2, b2, w3, s3, b3 = params
    cb = w1.shape[0]
    f32 = jnp.float32

    w1f = w1 * s1                      # (cb, cb): BN1 scale -> conv1 output cols
    dwf = dw * s2                      # (3, 3, cb): BN2 scale -> depthwise taps
    w3f = w3 * s3                      # (cb, cb): BN3 scale -> conv3 output cols
    # b2 folded through conv3 (+ BN3 bias); done with VPU ops to stay exact f32.
    b3p = (b2.reshape(cb, 1) * w3f).sum(axis=0) + b3.reshape(-1)     # (cb,)

    eye_w = jnp.eye(W, dtype=f32)
    # conv1 as a block-diagonal matmul over the fused (w, c) lane axis.
    w1big = jnp.kron(eye_w, w1f)                                     # (W*cb, W*cb)

    # conv3 fused with concat + channel shuffle (groups=2):
    #   even out-channels <- x1 passthrough, odd out-channels <- branch2.
    e1 = jnp.zeros((cb, 2 * cb), f32).at[jnp.arange(cb), 2 * jnp.arange(cb)].set(1.0)
    e2 = jnp.zeros((cb, 2 * cb), f32).at[:, 1::2].set(w3f)
    w3big = jnp.stack([jnp.kron(eye_w, e1), jnp.kron(eye_w, e2)], axis=0)  # (2, W*cb, 2*W*cb)

    dwt = jnp.tile(dwf, (1, 1, W))                                   # (3, 3, W*cb)

    b1t = jnp.tile(b1.reshape(-1), W)                                # (W*cb,)
    bct = jnp.zeros((W, 2 * cb), f32).at[:, 1::2].set(b3p).reshape(-1)   # (2*W*cb,)
    biases = jnp.stack([jnp.concatenate([b1t, jnp.zeros_like(b1t)]), bct], axis=0)
    return w1big, dwt, w3big, biases


# -------------------------- module forward (stride=1) ------------------------
def inverted_residual_stride1(x_nchw, params):
    B, C, H, W = x_nchw.shape
    cb = C // 2
    x_nhwc = jnp.transpose(x_nchw, (0, 2, 3, 1))
    x1 = x_nhwc[..., :cb].reshape(B * H, W * cb)    # passthrough branch, lane-dense
    x2 = x_nhwc[..., cb:].reshape(B * H, W * cb)    # branch2 input, lane-dense
    w1big, dwt, w3big, biases = prepare_fused_params(params, H, W)
    out = fused_unit_pallas(x1, x2, w1big, dwt, w3big, biases, B=B, H=H, W=W, cb=cb)
    out = out.reshape(B, H, W, C)                   # already concatenated + shuffled
    return jnp.transpose(out, (0, 3, 1, 2))         # back to NCHW


# --------------------------------- reference ---------------------------------
def _branch2_ref(x2_nhwc, params):
    w1, s1, b1, dw, s2, b2, w3, s3, b3 = params
    C = x2_nhwc.shape[-1]
    dn = ('NHWC', 'HWIO', 'NHWC')
    y = lax.conv_general_dilated(x2_nhwc, w1.reshape(1, 1, C, C), (1, 1),
                                 'VALID', dimension_numbers=dn)
    y = jnp.maximum(y * s1.reshape(1, 1, 1, C) + b1.reshape(1, 1, 1, C), 0.0)
    y = lax.conv_general_dilated(y, dw.reshape(3, 3, 1, C), (1, 1), 'SAME',
                                 dimension_numbers=dn, feature_group_count=C)
    y = y * s2.reshape(1, 1, 1, C) + b2.reshape(1, 1, 1, C)
    y = lax.conv_general_dilated(y, w3.reshape(1, 1, C, C), (1, 1),
                                 'VALID', dimension_numbers=dn)
    y = jnp.maximum(y * s3.reshape(1, 1, 1, C) + b3.reshape(1, 1, 1, C), 0.0)
    return y


def _reference_forward(x_nchw, params):
    B, C, H, W = x_nchw.shape
    cb = C // 2
    x_nhwc = jnp.transpose(x_nchw, (0, 2, 3, 1))
    x1, x2 = x_nhwc[..., :cb], x_nhwc[..., cb:]
    out = jnp.concatenate([x1, _branch2_ref(x2, params)], axis=-1)
    out = out.reshape(B, H, W, 2, cb).transpose(0, 1, 2, 4, 3).reshape(B, H, W, C)
    return jnp.transpose(out, (0, 3, 1, 2))


# -------------------------------- param setup --------------------------------
def make_params(key, cb):
    ks = jax.random.split(key, 15)
    w1 = jax.random.normal(ks[0], (cb, cb), jnp.float32) * 0.1      # (Cin, Cout)
    dw = jax.random.normal(ks[1], (3, 3, cb), jnp.float32) * 0.1    # depthwise
    w3 = jax.random.normal(ks[2], (cb, cb), jnp.float32) * 0.1

    def bn(kg, kb, km, kv):
        gamma = jax.random.uniform(kg, (1, cb), jnp.float32, 0.5, 1.5)
        beta = jax.random.normal(kb, (1, cb), jnp.float32) * 0.1
        mean = jax.random.normal(km, (1, cb), jnp.float32) * 0.1
        var = jax.random.uniform(kv, (1, cb), jnp.float32, 0.5, 1.5)
        return _fold_bn(gamma, beta, mean, var)

    s1, b1 = bn(ks[3], ks[4], ks[5], ks[6])
    s2, b2 = bn(ks[7], ks[8], ks[9], ks[10])
    s3, b3 = bn(ks[11], ks[12], ks[13], ks[14])
    return (w1, s1, b1, dw, s2, b2, w3, s3, b3)


# ----------------------------------- main -------------------------------------
if __name__ == "__main__":
    B, C, H, W = 2, 32, 8, 8          # in_channel = out_channel = 32, stride = 1
    cb = C // 2                       # branch_features = 16 -> W*cb = 128 lanes

    key = jax.random.PRNGKey(0)
    kx, kp = jax.random.split(key)
    x = jax.random.normal(kx, (B, C, H, W), jnp.float32)
    params = make_params(kp, cb)

    out = jax.block_until_ready(inverted_residual_stride1(x, params))
    ref = jax.block_until_ready(_reference_forward(x, params))

    assert out.shape == (B, C, H, W)
    assert jnp.allclose(out, ref, atol=1e-4, rtol=1e-4), \
        f"max abs diff {jnp.max(jnp.abs(out - ref))}"

    print("KERNEL_OK")
</pallas_src>

<mosaic_0001>
module attributes {stable_mosaic.version = 11 : i64} {
  func.func @kernel(%arg0: i32, %arg1: memref<8x128xf32, #tpu.memory_space<vmem>>, %arg2: memref<8x128xf32, #tpu.memory_space<vmem>>, %arg3: memref<128x128xf32, #tpu.memory_space<vmem>>, %arg4: memref<3x3x128xf32, #tpu.memory_space<vmem>>, %arg5: memref<2x128x256xf32, #tpu.memory_space<vmem>>, %arg6: memref<2x256xf32, #tpu.memory_space<vmem>>, %arg7: memref<8x256xf32, #tpu.memory_space<vmem>>) attributes {dimension_semantics = [#tpu.dimension_semantics<parallel>], iteration_bounds = array<i64: 2>, scalar_prefetch = 0 : i64, scratch_operands = 0 : i64, tpu.core_type = #tpu.core_type<tc>, window_params = [{transform_indices = @transform_0, window_bounds = array<i64: 8, 128>}, {transform_indices = @transform_1, window_bounds = array<i64: 8, 128>}, {pipeline_mode = #tpu.pipeline_mode<synchronous>, transform_indices = @transform_2, window_bounds = array<i64: 128, 128>}, {pipeline_mode = #tpu.pipeline_mode<synchronous>, transform_indices = @transform_3, window_bounds = array<i64: 3, 3, 128>}, {pipeline_mode = #tpu.pipeline_mode<synchronous>, transform_indices = @transform_4, window_bounds = array<i64: 2, 128, 256>}, {pipeline_mode = #tpu.pipeline_mode<synchronous>, transform_indices = @transform_5, window_bounds = array<i64: 2, 256>}, {transform_indices = @transform_6, window_bounds = array<i64: 8, 256>}]} {
    %c0 = arith.constant 0 : index
    %c0_0 = arith.constant 0 : index
    %0 = vector.load %arg6[%c0, %c0_0] : memref<2x256xf32, #tpu.memory_space<vmem>>, vector<2x256xf32>
    %1 = vector.extract_strided_slice %0 {offsets = [0, 0], sizes = [1, 128], strides = [1, 1]} : vector<2x256xf32> to vector<1x128xf32>
    %2 = vector.shape_cast %1 : vector<1x128xf32> to vector<128xf32>
    %3 = vector.shape_cast %2 : vector<128xf32> to vector<1x128xf32>
    %4 = vector.extract_strided_slice %0 {offsets = [1, 0], sizes = [1, 256], strides = [1, 1]} : vector<2x256xf32> to vector<1x256xf32>
    %5 = vector.shape_cast %4 : vector<1x256xf32> to vector<256xf32>
    %6 = vector.shape_cast %5 : vector<256xf32> to vector<1x256xf32>
    %c0_1 = arith.constant 0 : index
    %c0_2 = arith.constant 0 : index
    %7 = vector.load %arg2[%c0_1, %c0_2] : memref<8x128xf32, #tpu.memory_space<vmem>>, vector<8x128xf32>
    %c0_3 = arith.constant 0 : index
    %c0_4 = arith.constant 0 : index
    %8 = vector.load %arg3[%c0_3, %c0_4] : memref<128x128xf32, #tpu.memory_space<vmem>>, vector<128x128xf32>
    %cst = arith.constant dense<0.000000e+00> : vector<8x128xf32>
    %9 = tpu.matmul %7, %8, %cst {dimension_numbers = #tpu.dot_dimension_numbers<[1], [0], [0], [1], [0, 0, 1, 1], [], []>} : vector<8x128xf32>, vector<128x128xf32>, vector<8x128xf32> -> vector<8x128xf32>
    %10 = vector.broadcast %3 : vector<1x128xf32> to vector<8x128xf32>
    %11 = arith.addf %9, %10 : vector<8x128xf32>
    %cst_5 = arith.constant 0.000000e+00 : f32
    %12 = vector.broadcast %cst_5 : f32 to vector<8x128xf32>
    %13 = arith.maximumf %11, %12 : vector<8x128xf32>
    %cst_6 = arith.constant 0.000000e+00 : f32
    %14 = vector.broadcast %cst_6 : f32 to vector<8x128xf32>
    %15 = tpu.iota {dimensions = array<i32: 1>} : vector<8x128xi32>
    %16 = tpu.iota {dimensions = array<i32: 0>} : vector<8x128xi32>
    %c8_i32 = arith.constant 8 : i32
    %c0_i32 = arith.constant 0 : i32
    %17 = arith.cmpi eq, %c8_i32, %c0_i32 : i32
    %c1_i32 = arith.constant 1 : i32
    %18 = arith.select %17, %c1_i32, %c8_i32 : i32
    %19 = vector.broadcast %18 : i32 to vector<8x128xi32>
    %20 = arith.remsi %16, %19 : vector<8x128xi32>
    %c0_i32_7 = arith.constant 0 : i32
    %21 = vector.broadcast %c0_i32_7 : i32 to vector<8x128xi32>
    %22 = arith.cmpi ne, %20, %21 : vector<8x128xi32>
    %c0_i32_8 = arith.constant 0 : i32
    %23 = vector.broadcast %c0_i32_8 : i32 to vector<8x128xi32>
    %24 = arith.cmpi slt, %20, %23 : vector<8x128xi32>
    %c0_i32_9 = arith.constant 0 : i32
    %25 = arith.cmpi slt, %18, %c0_i32_9 : i32
    %26 = vector.broadcast %25 : i1 to vector<8x128xi1>
    %27 = vector.broadcast %26 : vector<8x128xi1> to vector<8x128xi1>
    %28 = arith.xori %24, %27 : vector<8x128xi1>
    %29 = arith.andi %28, %22 : vector<8x128xi1>
    %30 = vector.broadcast %18 : i32 to vector<8x128xi32>
    %31 = arith.addi %20, %30 : vector<8x128xi32>
    %32 = arith.select %29, %31, %20 : vector<8x128xi1>, vector<8x128xi32>
    %c16_i32 = arith.constant 16 : i32
    %33 = vector.broadcast %c16_i32 : i32 to vector<8x128xi32>
    %34 = arith.cmpi sge, %15, %33 : vector<8x128xi32>
    %c16_i32_10 = arith.constant 16 : i32
    %35 = tpu.dynamic_rotate %13 by %c16_i32_10 dim 1 : vector<8x128xf32>, i32 -> vector<8x128xf32>
    %36 = arith.select %34, %35, %14 : vector<8x128xi1>, vector<8x128xf32>
    %c112_i32 = arith.constant 112 : i32
    %37 = vector.broadcast %c112_i32 : i32 to vector<8x128xi32>
    %38 = arith.cmpi slt, %15, %37 : vector<8x128xi32>
    %c112_i32_11 = arith.constant 112 : i32
    %39 = tpu.dynamic_rotate %13 by %c112_i32_11 dim 1 : vector<8x128xf32>, i32 -> vector<8x128xf32>
    %40 = arith.select %38, %39, %14 : vector<8x128xi1>, vector<8x128xf32>
    %c0_i32_12 = arith.constant 0 : i32
    %41 = vector.broadcast %c0_i32_12 : i32 to vector<8x128xi32>
    %42 = arith.cmpi ne, %32, %41 : vector<8x128xi32>
    %c7_i32 = arith.constant 7 : i32
    %43 = vector.broadcast %c7_i32 : i32 to vector<8x128xi32>
    %44 = arith.cmpi ne, %32, %43 : vector<8x128xi32>
    %c0_13 = arith.constant 0 : index
    %c0_14 = arith.constant 0 : index
    %c0_15 = arith.constant 0 : index
    %45 = vector.load %arg4[%c0_13, %c0_14, %c0_15] : memref<3x3x128xf32, #tpu.memory_space<vmem>>, vector<3x3x128xf32>
    %c0_i32_16 = arith.constant 0 : i32
    %46 = arith.sitofp %c0_i32_16 : i32 to f32
    %47 = vector.broadcast %46 : f32 to vector<1x128xf32>
    %48 = tpu.concatenate %47, %36 in 0 : vector<1x128xf32>, vector<8x128xf32> -> vector<9x128xf32>
    %49 = vector.broadcast %46 : f32 to vector<1x128xf32>
    %50 = tpu.concatenate %48, %49 in 0 : vector<9x128xf32>, vector<1x128xf32> -> vector<10x128xf32>
    %51 = vector.extract_strided_slice %50 {offsets = [0, 0], sizes = [8, 128], strides = [1, 1]} : vector<10x128xf32> to vector<8x128xf32>
    %52 = arith.select %42, %51, %14 : vector<8x128xi1>, vector<8x128xf32>
    %53 = vector.extract_strided_slice %50 {offsets = [2, 0], sizes = [8, 128], strides = [1, 1]} : vector<10x128xf32> to vector<8x128xf32>
    %54 = arith.select %44, %53, %14 : vector<8x128xi1>, vector<8x128xf32>
    %55 = vector.extract_strided_slice %45 {offsets = [0, 0, 0], sizes = [1, 1, 128], strides = [1, 1, 1]} : vector<3x3x128xf32> to vector<1x1x128xf32>
    %56 = vector.shape_cast %55 : vector<1x1x128xf32> to vector<128xf32>
    %57 = vector.shape_cast %56 : vector<128xf32> to vector<1x128xf32>
    %58 = vector.broadcast %57 : vector<1x128xf32> to vector<8x128xf32>
    %59 = arith.mulf %52, %58 : vector<8x128xf32>
    %60 = vector.extract_strided_slice %45 {offsets = [1, 0, 0], sizes = [1, 1, 128], strides = [1, 1, 1]} : vector<3x3x128xf32> to vector<1x1x128xf32>
    %61 = vector.shape_cast %60 : vector<1x1x128xf32> to vector<128xf32>
    %62 = vector.shape_cast %61 : vector<128xf32> to vector<1x128xf32>
    %63 = vector.broadcast %62 : vector<1x128xf32> to vector<8x128xf32>
    %64 = arith.mulf %36, %63 : vector<8x128xf32>
    %65 = arith.addf %59, %64 : vector<8x128xf32>
    %66 = vector.extract_strided_slice %45 {offsets = [2, 0, 0], sizes = [1, 1, 128], strides = [1, 1, 1]} : vector<3x3x128xf32> to vector<1x1x128xf32>
    %67 = vector.shape_cast %66 : vector<1x1x128xf32> to vector<128xf32>
    %68 = vector.shape_cast %67 : vector<128xf32> to vector<1x128xf32>
    %69 = vector.broadcast %68 : vector<1x128xf32> to vector<8x128xf32>
    %70 = arith.mulf %54, %69 : vector<8x128xf32>
    %71 = arith.addf %65, %70 : vector<8x128xf32>
    %c0_i32_17 = arith.constant 0 : i32
    %72 = arith.sitofp %c0_i32_17 : i32 to f32
    %73 = vector.broadcast %72 : f32 to vector<1x128xf32>
    %74 = tpu.concatenate %73, %13 in 0 : vector<1x128xf32>, vector<8x128xf32> -> vector<9x128xf32>
    %75 = vector.broadcast %72 : f32 to vector<1x128xf32>
    %76 = tpu.concatenate %74, %75 in 0 : vector<9x128xf32>, vector<1x128xf32> -> vector<10x128xf32>
    %77 = vector.extract_strided_slice %76 {offsets = [0, 0], sizes = [8, 128], strides = [1, 1]} : vector<10x128xf32> to vector<8x128xf32>
    %78 = arith.select %42, %77, %14 : vector<8x128xi1>, vector<8x128xf32>
    %79 = vector.extract_strided_slice %76 {offsets = [2, 0], sizes = [8, 128], strides = [1, 1]} : vector<10x128xf32> to vector<8x128xf32>
    %80 = arith.select %44, %79, %14 : vector<8x128xi1>, vector<8x128xf32>
    %81 = vector.extract_strided_slice %45 {offsets = [0, 1, 0], sizes = [1, 1, 128], strides = [1, 1, 1]} : vector<3x3x128xf32> to vector<1x1x128xf32>
    %82 = vector.shape_cast %81 : vector<1x1x128xf32> to vector<128xf32>
    %83 = vector.shape_cast %82 : vector<128xf32> to vector<1x128xf32>
    %84 = vector.broadcast %83 : vector<1x128xf32> to vector<8x128xf32>
    %85 = arith.mulf %78, %84 : vector<8x128xf32>
    %86 = arith.addf %71, %85 : vector<8x128xf32>
    %87 = vector.extract_strided_slice %45 {offsets = [1, 1, 0], sizes = [1, 1, 128], strides = [1, 1, 1]} : vector<3x3x128xf32> to vector<1x1x128xf32>
    %88 = vector.shape_cast %87 : vector<1x1x128xf32> to vector<128xf32>
    %89 = vector.shape_cast %88 : vector<128xf32> to vector<1x128xf32>
    %90 = vector.broadcast %89 : vector<1x128xf32> to vector<8x128xf32>
    %91 = arith.mulf %13, %90 : vector<8x128xf32>
    %92 = arith.addf %86, %91 : vector<8x128xf32>
    %93 = vector.extract_strided_slice %45 {offsets = [2, 1, 0], sizes = [1, 1, 128], strides = [1, 1, 1]} : vector<3x3x128xf32> to vector<1x1x128xf32>
    %94 = vector.shape_cast %93 : vector<1x1x128xf32> to vector<128xf32>
    %95 = vector.shape_cast %94 : vector<128xf32> to vector<1x128xf32>
    %96 = vector.broadcast %95 : vector<1x128xf32> to vector<8x128xf32>
    %97 = arith.mulf %80, %96 : vector<8x128xf32>
    %98 = arith.addf %92, %97 : vector<8x128xf32>
    %c0_i32_18 = arith.constant 0 : i32
    %99 = arith.sitofp %c0_i32_18 : i32 to f32
    %100 = vector.broadcast %99 : f32 to vector<1x128xf32>
    %101 = tpu.concatenate %100, %40 in 0 : vector<1x128xf32>, vector<8x128xf32> -> vector<9x128xf32>
    %102 = vector.broadcast %99 : f32 to vector<1x128xf32>
    %103 = tpu.concatenate %101, %102 in 0 : vector<9x128xf32>, vector<1x128xf32> -> vector<10x128xf32>
    %104 = vector.extract_strided_slice %103 {offsets = [0, 0], sizes = [8, 128], strides = [1, 1]} : vector<10x128xf32> to vector<8x128xf32>
    %105 = arith.select %42, %104, %14 : vector<8x128xi1>, vector<8x128xf32>
    %106 = vector.extract_strided_slice %103 {offsets = [2, 0], sizes = [8, 128], strides = [1, 1]} : vector<10x128xf32> to vector<8x128xf32>
    %107 = arith.select %44, %106, %14 : vector<8x128xi1>, vector<8x128xf32>
    %108 = vector.extract_strided_slice %45 {offsets = [0, 2, 0], sizes = [1, 1, 128], strides = [1, 1, 1]} : vector<3x3x128xf32> to vector<1x1x128xf32>
    %109 = vector.shape_cast %108 : vector<1x1x128xf32> to vector<128xf32>
    %110 = vector.shape_cast %109 : vector<128xf32> to vector<1x128xf32>
    %111 = vector.broadcast %110 : vector<1x128xf32> to vector<8x128xf32>
    %112 = arith.mulf %105, %111 : vector<8x128xf32>
    %113 = arith.addf %98, %112 : vector<8x128xf32>
    %114 = vector.extract_strided_slice %45 {offsets = [1, 2, 0], sizes = [1, 1, 128], strides = [1, 1, 1]} : vector<3x3x128xf32> to vector<1x1x128xf32>
    %115 = vector.shape_cast %114 : vector<1x1x128xf32> to vector<128xf32>
    %116 = vector.shape_cast %115 : vector<128xf32> to vector<1x128xf32>
    %117 = vector.broadcast %116 : vector<1x128xf32> to vector<8x128xf32>
    %118 = arith.mulf %40, %117 : vector<8x128xf32>
    %119 = arith.addf %113, %118 : vector<8x128xf32>
    %120 = vector.extract_strided_slice %45 {offsets = [2, 2, 0], sizes = [1, 1, 128], strides = [1, 1, 1]} : vector<3x3x128xf32> to vector<1x1x128xf32>
    %121 = vector.shape_cast %120 : vector<1x1x128xf32> to vector<128xf32>
    %122 = vector.shape_cast %121 : vector<128xf32> to vector<1x128xf32>
    %123 = vector.broadcast %122 : vector<1x128xf32> to vector<8x128xf32>
    %124 = arith.mulf %107, %123 : vector<8x128xf32>
    %125 = arith.addf %119, %124 : vector<8x128xf32>
    %c0_19 = arith.constant 0 : index
    %c0_20 = arith.constant 0 : index
    %126 = vector.load %arg1[%c0_19, %c0_20] : memref<8x128xf32, #tpu.memory_space<vmem>>, vector<8x128xf32>
    %c0_21 = arith.constant 0 : index
    %c0_22 = arith.constant 0 : index
    %c0_23 = arith.constant 0 : index
    %127 = vector.load %arg5[%c0_21, %c0_22, %c0_23] : memref<2x128x256xf32, #tpu.memory_space<vmem>>, vector<1x128x256xf32>
    %128 = vector.shape_cast %127 : vector<1x128x256xf32> to vector<128x256xf32>
    %cst_24 = arith.constant dense<0.000000e+00> : vector<8x256xf32>
    %129 = tpu.matmul %126, %128, %cst_24 {dimension_numbers = #tpu.dot_dimension_numbers<[1], [0], [0], [1], [0, 0, 1, 1], [], []>} : vector<8x128xf32>, vector<128x256xf32>, vector<8x256xf32> -> vector<8x256xf32>
    %c1 = arith.constant 1 : index
    %c0_25 = arith.constant 0 : index
    %c0_26 = arith.constant 0 : index
    %130 = vector.load %arg5[%c1, %c0_25, %c0_26] : memref<2x128x256xf32, #tpu.memory_space<vmem>>, vector<1x128x256xf32>
    %131 = vector.shape_cast %130 : vector<1x128x256xf32> to vector<128x256xf32>
    %cst_27 = arith.constant dense<0.000000e+00> : vector<8x256xf32>
    %132 = tpu.matmul %125, %131, %cst_27 {dimension_numbers = #tpu.dot_dimension_numbers<[1], [0], [0], [1], [0, 0, 1, 1], [], []>} : vector<8x128xf32>, vector<128x256xf32>, vector<8x256xf32> -> vector<8x256xf32>
    %133 = arith.addf %129, %132 : vector<8x256xf32>
    %134 = vector.broadcast %6 : vector<1x256xf32> to vector<8x256xf32>
    %135 = arith.addf %133, %134 : vector<8x256xf32>
    %136 = tpu.iota {dimensions = array<i32: 1>} : vector<8x256xi32>
    %c1_i32_28 = arith.constant 1 : i32
    %137 = vector.broadcast %c1_i32_28 : i32 to vector<8x256xi32>
    %138 = arith.andi %136, %137 : vector<8x256xi32>
    %c1_i32_29 = arith.constant 1 : i32
    %139 = vector.broadcast %c1_i32_29 : i32 to vector<8x256xi32>
    %140 = arith.cmpi eq, %138, %139 : vector<8x256xi32>
    %cst_30 = arith.constant 0.000000e+00 : f32
    %141 = vector.broadcast %cst_30 : f32 to vector<8x256xf32>
    %142 = arith.maximumf %135, %141 : vector<8x256xf32>
    %143 = arith.select %140, %142, %135 : vector<8x256xi1>, vector<8x256xf32>
    %c0_31 = arith.constant 0 : index
    %c0_32 = arith.constant 0 : index
    %144 = vector.load %arg7[%c0_31, %c0_32] : memref<8x256xf32, #tpu.memory_space<vmem>>, vector<8x256xf32>
    tpu.vector_store %arg7[%c0_31, %c0_32], %143 {strides = array<i32>} : memref<8x256xf32, #tpu.memory_space<vmem>>, vector<8x256xf32>,
    return
  }
  func.func @transform_0(%arg0: i32) -> (i32, i32) {
    %c0_i32 = arith.constant 0 : i32
    %c0_i32_0 = arith.constant 0 : i32
    return %arg0, %c0_i32 : i32, i32
  }
  func.func @transform_1(%arg0: i32) -> (i32, i32) {
    %c0_i32 = arith.constant 0 : i32
    %c0_i32_0 = arith.constant 0 : i32
    return %arg0, %c0_i32 : i32, i32
  }
  func.func @transform_2(%arg0: i32) -> (i32, i32) {
    %c0_i32 = arith.constant 0 : i32
    %c0_i32_0 = arith.constant 0 : i32
    %c0_i32_1 = arith.constant 0 : i32
    return %c0_i32, %c0_i32_0 : i32, i32
  }
  func.func @transform_3(%arg0: i32) -> (i32, i32, i32) {
    %c0_i32 = arith.constant 0 : i32
    %c0_i32_0 = arith.constant 0 : i32
    %c0_i32_1 = arith.constant 0 : i32
    %c0_i32_2 = arith.constant 0 : i32
    return %c0_i32, %c0_i32_0, %c0_i32_1 : i32, i32, i32
  }
  func.func @transform_4(%arg0: i32) -> (i32, i32, i32) {
    %c0_i32 = arith.constant 0 : i32
    %c0_i32_0 = arith.constant 0 : i32
    %c0_i32_1 = arith.constant 0 : i32
    %c0_i32_2 = arith.constant 0 : i32
    return %c0_i32, %c0_i32_0, %c0_i32_1 : i32, i32, i32
  }
  func.func @transform_5(%arg0: i32) -> (i32, i32) {
    %c0_i32 = arith.constant 0 : i32
    %c0_i32_0 = arith.constant 0 : i32
    %c0_i32_1 = arith.constant 0 : i32
    return %c0_i32, %c0_i32_0 : i32, i32
  }
  func.func @transform_6(%arg0: i32) -> (i32, i32) {
    %c0_i32 = arith.constant 0 : i32
    %c0_i32_0 = arith.constant 0 : i32
    return %arg0, %c0_i32 : i32, i32
  }
}

</mosaic_0001>

<bundles_post_ra>
// kernel: tpu_custom_call.1
= control target key start
LH: loop header
LB: loop body
LE: loop exit
PB: predicated region body
PF: predicated region fallthrough
CT: control target
= control target key end

     0   :  { %s1838_s0 = inlined_call_operand.hbm [shape: f32[16,128], index: 0, kind: input, shape index: {}]   ;;  %s1839_s1 = inlined_call_operand.hbm [shape: f32[16,128], index: 1, kind: input, shape index: {}]   ;;  %s1840_s2 = inlined_call_operand.hbm [shape: f32[128,128], index: 2, kind: input, shape index: {}]   ;;  %s1841_s3 = inlined_call_operand.hbm [shape: f32[3,3,128], index: 3, kind: input, shape index: {}]   ;;  %s1842_s4 = inlined_call_operand.hbm [shape: f32[2,128,256], index: 4, kind: input, shape index: {}]   ;;  %s1843_s5 = inlined_call_operand.vmem [shape: f32[2,256], index: 5, kind: input, shape index: {}]   ;;  %s1844_s6 = inlined_call_operand.hbm [shape: f32[16,256], index: 6, kind: output, shape index: {}]  }
   0x1   :  { %1849 = sst [smem:[#allocation17_spill]] %s1840_s2 }
   0x2   :  { %1850 = sst [smem:[#allocation18_spill]] %s1841_s3 }
   0x3   :  { %1851 = sst [smem:[#allocation19_spill]] %s1842_s4 }
   0x4   :  { %11 = vsyncpa [#allocation3], 0 }
   0x5   :  { %13 = vsyncpa [#allocation3 + $0x1], 0 }
   0x6   :  { %14 = vsyncpa [#allocation6], 0 }
   0x7   :  { %16 = vsyncpa [#allocation6 + $0x1], 0 }
   0x8   :  { %17 = vsyncpa [#allocation9], 0 }
   0x9   :  { %18 = vsyncpa [#allocation4], 0 }
   0xa   :  { %20 = vsyncpa [#allocation4 + $0x1], 0  ;;  %s1473_s21 = smov 0   ;;  %s1475_s22 = smov 0  }
   0xb   :  { %s1477_s23 = smov 0   ;;  %s1479_s24 = smov 0  }
   0xc LB: > { %s1494_s25 = sadd.s32 4294967295, %s1419_s24   ;;  %s939_s26 = sadd.s32 4294967294, %s1419_s24   ;;  %s1419_s24 = sphi %s1479_s24, %s1879_s24   ;;  %s1415_s23 = sphi %s1477_s23, %s1878_s23   ;;  %s1411_s22 = sphi %s1475_s22, %s1877_s22   ;;  %s1407_s21 = sphi %s1473_s21, %s1876_s21  }
   0xd   : > { %p46_p0 = scmp.ne.s32.totalorder %s1411_s22, %s1407_s21  ;;  %p1845_p1 = scmp.eq.s32.totalorder %s1494_s25, 0 }
   0xe   : > { %p186_p3 = scmp.eq.s32.totalorder %s939_s26, 1  ;;  %p940_p5 = scmp.ge.s32.totalorder %s1419_s24, 1 }
   0xf   : > { %p1503_p4 = por %p1845_p1, %p46_p0  ;;  %p193_p7 = scmp.lt.s32.totalorder %s1419_s24, 3 }
  0x10   : > { %p1508_p6 = por %p186_p3, %p46_p0  ;;  %s1421_s30 = smov [#allocation7]  }
  0x11   : > { %s1852_s27 = scalar_select %p1503_p4, 1, 0 }
  0x12   : > { %s1853_s28 = scalar_select %p1508_p6, 1, 0 }
  0x13   : > { %p1513_p8 = pnand %p940_p5, %p193_p7  ;;  %s205_s7 = sshll.u32 %s1421_s30, 4  ;;  %s1517_s7 = int_to_ptr.vmem [resolvable:$true] %s205_s7 }
  0x14   : > { %s1422_s9 = smov [#allocation8]   ;;  %s1856_s2 = sld [smem:[#allocation17_spill]] }
  0x15   : > { %s1854_s29 = scalar_select %p1513_p8, 1, 0 }
  0x16   : > { %p1122_p9 = pneg %p1513_p8  ;;  %s218_s10 = sshll.u32 %s1422_s9, 4  ;;  %s1528_s10 = int_to_ptr.vmem [resolvable:$true] %s218_s10 }
  0x18   : > { %p1524_p11 = pnand %p1122_p9, %p1845_p1 }
  0x1a   : > { %s1197_s13 = scalar_lea.hbm %s1856_s2, 2048  ;;  %p1538_p13 = pneg %p1524_p11 }
  0x1b   : > { %p1198_p12 = scmp.ne.s32.totalorder %s1856_s2, %s1197_s13  ;;  %p1204_p5 = scmp.lt.u32.totalorder %s1197_s13, %s1856_s2 }
  0x1d   : > { %p1200_p0 = pnand %p1538_p13, %p1198_p12 }
  0x1f   : > { %p1201_p3 = pneg %p1200_p0 }
  0x21   : > { %p1206_p7 = pnand %p1204_p5, %p1201_p3 }
  0x23   : > { %1209 = shalt.err (!%p1206_p7)
}
  0x24   : > { %s1210_s19 = scalar_lea.vmem %s1517_s7, 2048  ;;  %p1218_p2 = scmp.lt.s32.totalorder %s1517_s7, %s1517_s7 }
  0x25   : > { %p1211_p9 = scmp.ne.s32.totalorder %s1517_s7, %s1210_s19  ;;  %p1219_p6 = scmp.lt.s32.totalorder %s1210_s19, %s1210_s19 }
  0x27   : > { %p1213_p10 = pnand %p1211_p9, %p1538_p13  ;;  %p1220_p12 = por %p1219_p6, %p1218_p2 }
  0x29   : > { %p1214_p1 = pneg %p1213_p10 }
  0x2b   : > { %p1221_p0 = pnand %p1220_p12, %p1214_p1 }
  0x2d   : > { %1224 = shalt.err (!%p1221_p0)
}
  0x2e   : > { %s1423_s20 = smov 128   ;;  %s1424_s26 = smov 8  }
  0x2f   : > { %1125 = dma.hbm_to_vmem [thread:$0]  (!%p1524_p11), %s1856_s2, 2048, %s1517_s7, [#allocation6], %s1423_s20, %s1423_s20, %s1424_s26  }
  0x30   : > { %s1858_s3 = sld [smem:[#allocation18_spill]] }
  0x36   : > { %s1225_s13 = scalar_lea.hbm %s1858_s3, 192 }
  0x37   : > { %p1226_p2 = scmp.ne.s32.totalorder %s1858_s3, %s1225_s13  ;;  %p1232_p10 = scmp.lt.u32.totalorder %s1225_s13, %s1858_s3 }
  0x39   : > { %p1228_p1 = pnand %p1226_p2, %p1538_p13 }
  0x3b   : > { %p1229_p6 = pneg %p1228_p1 }
  0x3d   : > { %p1234_p3 = pnand %p1232_p10, %p1229_p6 }
  0x3f   : > { %1237 = shalt.err (!%p1234_p3)
}
  0x40   : > { %s1238_s7 = scalar_lea.vmem %s1528_s10, 192  ;;  %p1246_p12 = scmp.lt.s32.totalorder %s1528_s10, %s1528_s10 }
  0x41   : > { %p1239_p5 = scmp.ne.s32.totalorder %s1528_s10, %s1238_s7  ;;  %p1247_p0 = scmp.lt.s32.totalorder %s1238_s7, %s1238_s7 }
  0x43   : > { %p1241_p7 = pnand %p1239_p5, %p1538_p13  ;;  %p1248_p2 = por %p1247_p0, %p1246_p12 }
  0x45   : > { %p1242_p9 = pneg %p1241_p7 }
  0x47   : > { %p1249_p1 = pnand %p1248_p2, %p1242_p9 }
  0x49   : > { %1252 = shalt.err (!%p1249_p1)
}
  0x4a   : > { %s1425_s19 = smov 64   ;;  %s1426_s20 = smov 4  }
  0x4b   : > { %1128 = dma.hbm_to_vmem [thread:$0]  (!%p1524_p11), %s1858_s3, 192, %s1528_s10, [#allocation9], %s1425_s19, %s1425_s19, %s1426_s20  }
  0x4c   : > { %s1427_s9 = smov [#allocation10]   ;;  %s1859_s4 = sld [smem:[#allocation19_spill]] }
  0x4d   : > { %s231_s11 = sshll.u32 %s1427_s9, 4  ;;  %s232_s11 = int_to_ptr.vmem [resolvable:$true] %s231_s11 }
  0x52   : > { %s1253_s14 = scalar_lea.hbm %s1859_s4, 8192 }
  0x53   : > { %p1254_p6 = scmp.ne.s32.totalorder %s1859_s4, %s1253_s14  ;;  %p1260_p5 = scmp.lt.u32.totalorder %s1253_s14, %s1859_s4 }
  0x55   : > { %p1256_p10 = pnand %p1254_p6, %p1538_p13 }
  0x57   : > { %p1257_p3 = pneg %p1256_p10 }
  0x59   : > { %p1262_p7 = pnand %p1260_p5, %p1257_p3 }
  0x5b   : > { %1265 = shalt.err (!%p1262_p7)
}
  0x5c   : > { %s1266_s10 = scalar_lea.vmem %s232_s11, 8192  ;;  %p1274_p2 = scmp.lt.s32.totalorder %s232_s11, %s232_s11 }
  0x5d   : > { %p1267_p9 = scmp.ne.s32.totalorder %s232_s11, %s1266_s10  ;;  %p1275_p1 = scmp.lt.s32.totalorder %s1266_s10, %s1266_s10 }
  0x5f   : > { %p1269_p12 = pnand %p1267_p9, %p1538_p13  ;;  %p1276_p4 = por %p1275_p1, %p1274_p2 }
  0x61   : > { %p1270_p0 = pneg %p1269_p12 }
  0x63   : > { %p1277_p8 = pnand %p1276_p4, %p1270_p0 }
  0x65   : > { %1280 = shalt.err (!%p1277_p8)
}
  0x66   : > { %s1428_s19 = smov 256   ;;  %s1429_s16 = smov 16  }
  0x67   : > { %1131 = dma.hbm_to_vmem [thread:$0]  (!%p1524_p11), %s1859_s4, 8192, %s232_s11, [#allocation9], %s1428_s19, %s1428_s19, %s1429_s16  }
  0x68   : > { %s1601_s30 = sadd.s32 1, %s1419_s24   ;;  %s33_s12 = sadd.s32 1, %s1415_s23 }
  0x69   : > { %s30_s9 = ssub.s32 %s1419_s24, %s1601_s30  ;;  %p40_p8 = scmp.ne.s32.totalorder %s1415_s23, %s1411_s22 }
  0x6a   : > { %p31_p4 = scmp.eq.s32.totalorder %s30_s9, 0  ;;  %p41_p13 = scmp.eq.s32.totalorder %s1419_s24, 0 }
  0x6b   : > { %p1146_p6 = scmp.lt.s32.totalorder %s1419_s24, 2  ;;  %p1860_p3 = scmp.eq.s32.totalorder %s1494_s25, 1 }
  0x6c   : > { %s1611_s13 = scalar_select %p31_p4, %s1415_s23, %s33_s12  }
  0x6d   : > { %p42_p10 = por %p41_p13, %p40_p8  ;;  %p1615_p5 = por %p1860_p3, %p40_p8 }
  0x6e   : > { %s248_s8 = sand.u32 1, %s1415_s23   ;;  %s946_s15 = sshll.u32 %s1419_s24, 7 }
  0x6f   : > { %s1861_s14 = scalar_select %p1615_p5, 1, 0 }
  0x70   : > { %s1621_s11 = sshll.u32 %s248_s8, 3  ;;  %s1626_s7 = scalar_lea.hbm %s1838_s0, %s946_s15 }
  0x71   : > { %s252_s10 = scalar_lea.vmem [#allocation2], %s1621_s11  ;;  %p1629_p11 = pnand %p1146_p6, %p42_p10 }
  0x72   : > { %s259_s19 = sshll.u32 %s252_s10, 4  ;;  %s1638_s9 = scalar_lea.hbm %s1839_s1, %s946_s15  ;;  %s1633_s19 = int_to_ptr.vmem [resolvable:$true] %s259_s19 }
  0x73   : > { %s249_s12 = scalar_lea.sflag [#allocation3], %s248_s8  ;;  %s1281_s17 = scalar_lea.hbm %s1626_s7, 128 }
  0x74   : > { %p1282_p7 = scmp.ne.s32.totalorder %s1626_s7, %s1281_s17  ;;  %p1283_p9 = pneg %p1629_p11 }
  0x75   : > { %s1286_s2 = scalar_lea.hbm %s1838_s0, 256  ;;  %p1287_p2 = scmp.lt.u32.totalorder %s1626_s7, %s1838_s0 }
  0x76   : > { %p1284_p12 = pnand %p1283_p9, %p1282_p7  ;;  %p1288_p1 = scmp.lt.u32.totalorder %s1286_s2, %s1281_s17 }
  0x77   : > { %p1290_p8 = scmp.lt.u32.totalorder %s1281_s17, %s1626_s7 }
  0x78   : > { %p1285_p0 = pneg %p1284_p12  ;;  %p1289_p4 = por %p1288_p1, %p1287_p2 }
  0x7a   : > { %p1291_p13 = por %p1290_p8, %p1289_p4 }
  0x7c   : > { %p1292_p6 = pnand %p1291_p13, %p1285_p0 }
  0x7e   : > { %1295 = shalt.err (!%p1292_p6)
}
  0x7f   : > { %s1296_s8 = scalar_lea.vmem %s1633_s19, 128  ;;  %s1430_s15 = smov [#allocation2]  }
  0x80   : > { %p1297_p10 = scmp.ne.s32.totalorder %s1633_s19, %s1296_s8  ;;  %s1301_s20 = sshll.u32 %s1430_s15, 4  ;;  %s1302_s20 = int_to_ptr.vmem [resolvable:$false] %s1301_s20 }
  0x81   : > { %s1303_s3 = scalar_lea.vmem %s1302_s20, 256  ;;  %p1304_p12 = scmp.lt.s32.totalorder %s1633_s19, %s1302_s20 }
  0x82   : > { %p1299_p3 = pnand %p1297_p10, %p1283_p9  ;;  %p1305_p2 = scmp.lt.s32.totalorder %s1303_s3, %s1296_s8 }
  0x84   : > { %p1300_p7 = pneg %p1299_p3  ;;  %p1306_p1 = por %p1305_p2, %p1304_p12 }
  0x86   : > { %p1307_p4 = pnand %p1306_p1, %p1300_p7 }
  0x88   : > { %1310 = shalt.err (!%p1307_p4)
}
  0x89   : > { %1135 = dma.hbm_to_vmem [thread:$0]  (!%p1629_p11), %s1626_s7, 128, %s1633_s19, %s249_s12  }
  0x8a   : > { %s266_s2 = sand.u32 1, %s1419_s24   ;;  %s270_s4 = scalar_lea.vmem [#allocation5], %s1621_s11 }
  0x8b   : > { %s277_s26 = sshll.u32 %s270_s4, 4  ;;  %s267_s17 = scalar_lea.sflag [#allocation6], %s266_s2  ;;  %s278_s26 = int_to_ptr.vmem [resolvable:$true] %s277_s26 }
  0x8c   : > { %s1311_s18 = scalar_lea.hbm %s1638_s9, 128  ;;  %s1316_s15 = scalar_lea.hbm %s1839_s1, 256 }
  0x8d   : > { %p1312_p0 = scmp.ne.s32.totalorder %s1638_s9, %s1311_s18  ;;  %p1317_p6 = scmp.lt.u32.totalorder %s1638_s9, %s1839_s1 }
  0x8e   : > { %p1318_p10 = scmp.lt.u32.totalorder %s1316_s15, %s1311_s18  ;;  %p1320_p7 = scmp.lt.u32.totalorder %s1311_s18, %s1638_s9 }
  0x8f   : > { %p1314_p8 = pnand %p1312_p0, %p1283_p9 }
  0x90   : > { %p1319_p3 = por %p1318_p10, %p1317_p6 }
  0x91   : > { %p1315_p13 = pneg %p1314_p8 }
  0x92   : > { %p1321_p12 = por %p1320_p7, %p1319_p3 }
  0x94   : > { %p1322_p2 = pnand %p1321_p12, %p1315_p13 }
  0x96   : > { %1325 = shalt.err (!%p1322_p2)
}
  0x97   : > { %s1326_s11 = scalar_lea.vmem %s278_s26, 128  ;;  %s1431_s7 = smov [#allocation5]  }
  0x98   : > { %p1327_p1 = scmp.ne.s32.totalorder %s278_s26, %s1326_s11  ;;  %s1331_s19 = sshll.u32 %s1431_s7, 4  ;;  %s1332_s19 = int_to_ptr.vmem [resolvable:$false] %s1331_s19 }
  0x99   : > { %s1333_s12 = scalar_lea.vmem %s1332_s19, 256  ;;  %p1334_p8 = scmp.lt.s32.totalorder %s278_s26, %s1332_s19 }
  0x9a   : > { %p1329_p4 = pnand %p1327_p1, %p1283_p9  ;;  %p1335_p5 = scmp.lt.s32.totalorder %s1333_s12, %s1326_s11 }
  0x9c   : > { %p1330_p0 = pneg %p1329_p4  ;;  %p1336_p6 = por %p1335_p5, %p1334_p8 }
  0x9e   : > { %p1337_p10 = pnand %p1336_p6, %p1330_p0 }
  0xa0   : > { %1340 = shalt.err (!%p1337_p10)
}
  0xa1   : > { %1138 = dma.hbm_to_vmem [thread:$0]  (!%p1629_p11), %s1638_s9, 128, %s278_s26, %s267_s17  }
  0xa2   : > { %p1863_p13 = scmp.ne.s32.totalorder %s1854_s29, 0 }
  0xa3   : > { %s1689_s2 = sand.u32 (!%p1863_p13), 1, %s1411_s22   ;;  %p1864_p5 = scmp.ne.s32.totalorder (!%p1863_p13), %s1852_s27, 0 }
  0xa4   : > { %286 = sbr.rel (%p1863_p13) target bundleno = 835 (0x343), region = 44  ;;  %s950_s4 = sshll.u32 (!%p1863_p13), %s1689_s2, 3 }
  0xa5   : > { %s289_s18 = scalar_lea.sflag (!%p1863_p13), [#allocation3], %s1689_s2  ;;  %s1693_s10 = scalar_lea.vmem (!%p1863_p13), [#allocation2], %s950_s4 }
  0xab   : > { %1386 = dma.done.wait (%p1864_p5), %s289_s18, 128  }
  0xac   : > { %1388 = vsyncadd (%p1864_p5), %s289_s18, 4294967168  ;;  %s297_s16 = sand.u32 1, %s1494_s25   ;;  %s1700_s9 = scalar_lea.vmem [#allocation5], %s950_s4 }
  0xad   : > { %s298_s29 = scalar_lea.sflag [#allocation6], %s297_s16 }
  0xae   : > { %1390 = dma.done.wait (%p1864_p5), %s298_s29, 128  }
  0xaf   : > { %1392 = vsyncadd (%p1864_p5), %s298_s29, 4294967168  ;;  %p1865_p11 = scmp.eq.s32.totalorder %s1494_s25, 0 }
  0xb1   : > { %1394 = dma.done.wait (%p1865_p11), [#allocation6], 2048   ;;  %p1866_p9 = pmov %p1865_p11 }
  0xb3   : > { %1396 = vsyncadd (%p1866_p9), [#allocation6], 4294965248  ;;  %p1867_p3 = pmov %p1866_p9 }
  0xb5   : > { %1398 = dma.done.wait (%p1867_p3), [#allocation9], 8384   ;;  %p1868_p7 = pmov %p1867_p3 }
  0xb6   : > { %v1432_v0 = vmov 0.0|0.0   ;;  %vm1433_vm0 = vmmov 0   ;;  %v1434_v1 = vmov 0.0   ;;  %v349_v2 = vld [vmem:[#allocation7] sm:$0xff]  ;;  %v350_v3 = vld [vmem:[#allocation7 + $0x8] sm:$0xff]  ;;  %v351_v4 = vld [vmem:[#allocation7 + $0x10] sm:$0xff]  ;;  %v365_v42 = vlaneseq }
  0xb7   : > { %1400 = vsyncadd (%p1868_p7), [#allocation9], 4294958912  ;;  %1014 = vmatprep.subr.bf16.mxu0 %v1432_v0  ;;  %1011 = vmatprep.mubr.msk.f32.mxu0 %vm1433_vm0, %v1434_v1  ;;  %v1015_v5 = vpack.c.bf16 %v350_v3, %v349_v2  ;;  %v352_v6 = vld [vmem:[#allocation7 + $0x18] sm:$0xff]  ;;  %v353_v8 = vld [vmem:[#allocation7 + $0x20] sm:$0xff]  ;;  %s1435_s17 = smov 16   ;;  %s1436_s8 = smov 112  }
  0xb8   : > { %693 = vmatprep.mubr.f32.mxu1 %v1434_v1  ;;  %v1018_v7 = vpack.c.bf16 %v352_v6, %v351_v4  ;;  %v354_v9 = vld [vmem:[#allocation7 + $0x28] sm:$0xff]  ;;  %v355_v11 = vld [vmem:[#allocation7 + $0x30] sm:$0xff]  ;;  %v356_v12 = vld [vmem:[#allocation7 + $0x38] sm:$0xff]  ;;  %v1717_v43 = vshrl.u32 %v365_v42, 7  ;;  %vm472_vm1 = vcmask 1040384   ;;  %vm478_vm5 = vcmask 1045504  }
  0xb9   : > { %1016 = vmatpush3.bf16.msra.mxu0 %v1015_v5  ;;  %v1021_v10 = vpack.c.bf16 %v354_v9, %v353_v8  ;;  %v1024_v13 = vpack.c.bf16 %v356_v12, %v355_v11  ;;  %v357_v14 = vld [vmem:[#allocation7 + $0x40] sm:$0xff]  ;;  %v358_v15 = vld [vmem:[#allocation7 + $0x48] sm:$0xff]  ;;  %v359_v17 = vld [vmem:[#allocation7 + $0x50] sm:$0xff]  ;;  %s955_s15 = sshll.u32 %s1689_s2, 4  ;;  %s961_s20 = sshll.u32 %s1494_s25, 8 }
  0xba   : > { %1017 = vmatprep.subr.bf16.mxu0 %v1432_v0  ;;  %v1027_v16 = vpack.c.bf16 %v358_v15, %v357_v14  ;;  %v360_v18 = vld [vmem:[#allocation7 + $0x58] sm:$0xff]  ;;  %v361_v20 = vld [vmem:[#allocation7 + $0x60] sm:$0xff]  ;;  %v362_v21 = vld [vmem:[#allocation7 + $0x68] sm:$0xff]  ;;  %v1720_v49 = vsub.s32 0, %v1717_v43  ;;  %s346_s3 = scalar_lea.vmem [#allocation11], %s955_s15  ;;  %s1794_s12 = scalar_lea.hbm %s1844_s6, %s961_s20 }
  0xbb   : > { %v1030_v19 = vpack.c.bf16 %v360_v18, %v359_v17  ;;  %v1033_v22 = vpack.c.bf16 %v362_v21, %v361_v20  ;;  %v363_v23 = vld [vmem:[#allocation7 + $0x70] sm:$0xff]  ;;  %v364_v24 = vld [vmem:[#allocation7 + $0x78] sm:$0xff]  ;;  %v600_v28 = vld [vmem:[#allocation10 + $0x118] sm:$0xff]  ;;  %s818_s11 = sshll.u32 %s346_s3, 4  ;;  %s804_s25 = scalar_lea.sflag [#allocation4], %s1689_s2  ;;  %s1796_s11 = int_to_ptr.vmem [resolvable:$true] %s818_s11 }
  0xbc   : > { %v1036_v25 = vpack.c.bf16 %v364_v24, %v363_v23  ;;  %v348_v26 = vld [vmem:[%s1700_s9] sm:$0xff]  ;;  %v604_v33 = vld [vmem:[#allocation10 + $0x138] sm:$0xff]  ;;  %v1725_v53 = vld [vmem:[%s1843_s5] sm:$0xf]  ;;  %v1733_v24 = vand.u32 127, %v365_v42  ;;  %s1341_s4 = scalar_lea.vmem %s1796_s11, 256 }
  0xbd   : > { %1019 = vmatpush3.bf16.msra.mxu0 %v1018_v7  ;;  %v598_v27 = vld [vmem:[#allocation10 + $0x108] sm:$0xff]  ;;  %v597_v29 = vld [vmem:[#allocation10 + $0x100] sm:$0xff]  ;;  %v599_v31 = vld [vmem:[#allocation10 + $0x110] sm:$0xff]  ;;  %v368_v57 = vrot.slane %v1725_v53, %v1720_v49  ;;  %p1342_p12 = scmp.ne.s32.totalorder %s1796_s11, %s1341_s4  ;;  %p1873_p2 = scmp.ne.s32.totalorder %s1861_s14, 0 }
  0xbe   : > { %1020 = vmatprep.subr.bf16.mxu0 %v1432_v0  ;;  %v1038_v30 = vpack.c.bf16 %v600_v28, %v598_v27  ;;  %v602_v32 = vld [vmem:[#allocation10 + $0x128] sm:$0xff]  ;;  %v1040_v34 = vpack.c.bf16 %v599_v31, %v597_v29  ;;  %v601_v36 = vld [vmem:[#allocation10 + $0x120] sm:$0xff]  ;;  %v603_v37 = vld [vmem:[#allocation10 + $0x130] sm:$0xff]  ;;  %vm456_vm2 = vcmp.ge.s32.totalorder %v1733_v24, 16  ;;  %vm460_vm3 = vcmp.lt.s32.totalorder %v1733_v24, 112  ;;  %s1437_s18 = smov [#allocation11]  }
  0xbf   : > { %v1042_v35 = vpack.c.bf16 %v604_v33, %v602_v32  ;;  %v606_v38 = vld [vmem:[#allocation10 + $0x148] sm:$0xff]  ;;  %v608_v39 = vld [vmem:[#allocation10 + $0x158] sm:$0xff]  ;;  %v1044_v40 = vpack.c.bf16 %v603_v37, %v601_v36  ;;  %v605_v44 = vld [vmem:[#allocation10 + $0x140] sm:$0xff]  ;;  %p1343_p1 = pnand %p1342_p12, %p1873_p2 }
  0xc0   : > { %1039 = vmatprep.subr.bf16.mxu1 %v1038_v30  ;;  %v1046_v41 = vpack.c.bf16 %v608_v39, %v606_v38  ;;  %v607_v45 = vld [vmem:[#allocation10 + $0x150] sm:$0xff]  ;;  %v610_v47 = vld [vmem:[#allocation10 + $0x168] sm:$0xff]  ;;  %v612_v48 = vld [vmem:[#allocation10 + $0x178] sm:$0xff]  ;;  %v1749_v39 = vsub.s32 1, %v1717_v43 }
  0xc1   : > { %1022 = vmatpush3.bf16.msra.mxu0 %v1021_v10  ;;  %1041 = vmatpush1.bf16.msra.mxu1 %v1040_v34  ;;  %v1048_v46 = vpack.c.bf16 %v607_v45, %v605_v44  ;;  %v1050_v50 = vpack.c.bf16 %v612_v48, %v610_v47  ;;  %v609_v51 = vld [vmem:[#allocation10 + $0x160] sm:$0xff]  ;;  %v611_v52 = vld [vmem:[#allocation10 + $0x170] sm:$0xff]  ;;  %v614_v55 = vld [vmem:[#allocation10 + $0x188] sm:$0xff]  ;;  %p1344_p4 = pneg %p1343_p1 }
  0xc2   : > { %1023 = vmatprep.subr.bf16.mxu0 %v1432_v0  ;;  %1043 = vmatprep.subr.bf16.mxu1 %v1042_v35  ;;  %v1052_v54 = vpack.c.bf16 %v611_v52, %v609_v51  ;;  %v616_v56 = vld [vmem:[#allocation10 + $0x198] sm:$0xff]  ;;  %v613_v59 = vld [vmem:[#allocation10 + $0x180] sm:$0xff]  ;;  %v615_v60 = vld [vmem:[#allocation10 + $0x190] sm:$0xff] }
  0xc3   : > { %v1054_v58 = vpack.c.bf16 %v616_v56, %v614_v55  ;;  %v1056_v61 = vpack.c.bf16 %v615_v60, %v613_v59  ;;  %v618_v63 = vld [vmem:[#allocation10 + $0x1a8] sm:$0xff]  ;;  %v617_v5 = vld [vmem:[#allocation10 + $0x1a0] sm:$0xff]  ;;  %v619_v6 = vld [vmem:[#allocation10 + $0x1b0] sm:$0xff] }
  0xc4   : > { %v1060_v7 = vpack.c.bf16 %v619_v6, %v617_v5  ;;  %v622_v9 = vld [vmem:[#allocation10 + $0x1c8] sm:$0xff]  ;;  %v624_v10 = vld [vmem:[#allocation10 + $0x1d8] sm:$0xff]  ;;  %v621_v12 = vld [vmem:[#allocation10 + $0x1c0] sm:$0xff] }
  0xc5   : > { %1025 = vmatpush3.bf16.msra.mxu0 %v1024_v13  ;;  %1045 = vmatpush1.bf16.msra.mxu1 %v1044_v40  ;;  %v1062_v11 = vpack.c.bf16 %v624_v10, %v622_v9  ;;  %v623_v13 = vld [vmem:[#allocation10 + $0x1d0] sm:$0xff]  ;;  %v626_v15 = vld [vmem:[#allocation10 + $0x1e8] sm:$0xff]  ;;  %v625_v18 = vld [vmem:[#allocation10 + $0x1e0] sm:$0xff] }
  0xc6   : > { %1026 = vmatprep.subr.bf16.mxu0 %v1432_v0  ;;  %1047 = vmatprep.subr.bf16.mxu1 %v1046_v41  ;;  %v1064_v14 = vpack.c.bf16 %v623_v13, %v621_v12  ;;  %v565_v21 = vld [vmem:[#allocation10 + $0x8] sm:$0xff]  ;;  %v467_v27 = vld [vmem:[#allocation8 + $0x4] sm:$0x7]  ;;  %v466_v30 = vld [vmem:[#allocation8] sm:$0x7] }
  0xc7   : > { %v468_v33 = vld [vmem:[#allocation8 + $0x8] sm:$0x7]  ;;  %v487_v34 = vrot.slane %v466_v30, %v1720_v49  ;;  %v492_v35 = vrot.slane %v467_v27, %v1720_v49  ;;  %v517_v55 = vrot.slane %v466_v30, %v1749_v39 }
  0xc8   : > { %v498_v38 = vrot.slane %v468_v33, %v1720_v49  ;;  %v575_v37 = vld [vmem:[#allocation10 + $0x58] sm:$0xff] }
  0xc9   : > { %1028 = vmatpush3.bf16.msra.mxu0 %v1027_v16  ;;  %1049 = vmatpush1.bf16.msra.mxu1 %v1048_v46  ;;  %v628_v16 = vld [vmem:[#allocation10 + $0x1f8] sm:$0xff] }
  0xca   : > { %1029 = vmatprep.subr.bf16.mxu0 %v1432_v0  ;;  %1051 = vmatprep.subr.bf16.mxu1 %v1050_v50  ;;  %v1066_v17 = vpack.c.bf16 %v628_v16, %v626_v15 }
  0xcd   : > { %1031 = vmatpush3.bf16.msra.mxu0 %v1030_v19  ;;  %1053 = vmatpush1.bf16.msra.mxu1 %v1052_v54  ;;  %v627_v19 = vld [vmem:[#allocation10 + $0x1f0] sm:$0xff]  ;;  %v580_v54 = vld [vmem:[#allocation10 + $0x80] sm:$0xff] }
  0xce   : > { %1032 = vmatprep.subr.bf16.mxu0 %v1432_v0  ;;  %1055 = vmatprep.subr.bf16.mxu1 %v1054_v58  ;;  %v1068_v20 = vpack.c.bf16 %v627_v19, %v625_v18 }
  0xd1   : > { %1034 = vmatpush3.bf16.msra.mxu0 %v1033_v22  ;;  %1057 = vmatpush1.bf16.msra.mxu1 %v1056_v61  ;;  %v567_v22 = vld [vmem:[#allocation10 + $0x18] sm:$0xff] }
  0xd2   : > { %1035 = vmatprep.subr.bf16.mxu0 %v1432_v0  ;;  %v620_v0 = vld [vmem:[#allocation10 + $0x1b8] sm:$0xff]  ;;  %v1070_v23 = vpack.c.bf16 %v567_v22, %v565_v21 }
  0xd3   : > { %v1058_v4 = vpack.c.bf16 %v620_v0, %v618_v63 }
  0xd5   : > { %1037 = vmatpush3.bf16.msra.mxu0 %v1036_v25  ;;  %1059 = vmatprep.subr.bf16.mxu1 %v1058_v4 }
  0xd6   : > { %1061 = vmatpush1.bf16.msra.mxu1 %v1060_v7 }
  0xd7   : > { %1063 = vmatprep.subr.bf16.mxu1 %v1062_v11 }
  0xd8   : > { %1012 = vmatmul.mubr.f32.vlgmr.msra.gmra.mrb[0].mxu0 %v348_v26  ;;  %v448_v26 = vand.u32 7, %v1717_v43 }
  0xda   : > { %1065 = vmatpush1.bf16.msra.mxu1 %v1064_v14  ;;  %vm1743_vm4 = vcmp.ne.s32.totalorder %v448_v26, 0  ;;  %vm1755_vm6 = vcmp.ne.s32.totalorder %v448_v26, 7  ;;  %v566_v26 = vld [vmem:[#allocation10 + $0x10] sm:$0xff] }
  0xdb   : > { %1067 = vmatprep.subr.bf16.mxu1 %v1066_v17 }
  0xde   : > { %1069 = vmatpush1.bf16.msra.mxu1 %v1068_v20 }
  0xdf   : > { %1071 = vmatprep.subr.bf16.mxu1 %v1070_v23 }
 0x1ab   : > { %v435_v62 = vpop.f32.mrb[0].mxu0 }
 0x1ac   : > { %v436_v2 = vadd.f32 %v435_v62, %v368_v57  ;;  %v1013_v3 = vpop.f32.mrb[1].mxu0  ;;  %v523_v62 = vrot.slane %v467_v27, %v1749_v39 }
 0x1ad   : > { %v547_v3 = vsub.s32 2, %v1717_v43 }
 0x1ae   : > { %v1729_v8 = vmax.f32 %v436_v2, 0.0  ;;  %v529_v2 = vrot.slane %v468_v33, %v1749_v39 }
 0x1af   : > { %v548_v12 = vrot.slane %v466_v30, %v547_v3  ;;  %v554_v14 = vrot.slane %v467_v27, %v547_v3  ;;  %v560_v20 = vrot.slane %v468_v33, %v547_v3  ;;  %v590_v3 = vld [vmem:[#allocation10 + $0xd0] sm:$0xff] }
 0x1b0   : > { %457 = vrot.lane.b32.xlu0 %v1729_v8, %s1435_s17  ;;  %v502_v25 = vrot.slane %v1729_v8, 7  ;;  %v524_v11 = vmul.f32 %v523_v62, %v1729_v8  ;;  %v591_v62 = vld [vmem:[#allocation10 + $0xd8] sm:$0xff] }
 0x1b2   : > { %v505_v29 = vsel %vm472_vm1, %v502_v25, 0.0  ;;  %v504_v32 = vsel %vm472_vm1, 0.0, %v502_v25  ;;  %v564_v25 = vld [vmem:[#allocation10] sm:$0xff] }
 0x1b3   : > { %v510_v40 = vrot.slane %v505_v29, 2  ;;  %v509_v44 = vrot.slane %v504_v32, 2  ;;  %v506_v57 = vsel %vm1743_vm4, %v504_v32, 0.0 }
 0x1b4   : > { %461 = vrot.lane.b32.xlu0 %v1729_v8, %s1436_s8  ;;  %v518_v5 = vmul.f32 %v517_v55, %v506_v57  ;;  %v569_v8 = vld [vmem:[#allocation10 + $0x28] sm:$0xff] }
 0x1b5   : > { %v511_v0 = vsel %vm478_vm5, %v509_v44, %v510_v40  ;;  %v572_v40 = vld [vmem:[#allocation10 + $0x40] sm:$0xff]  ;;  %v579_v44 = vld [vmem:[#allocation10 + $0x78] sm:$0xff]  ;;  %v585_v55 = vld [vmem:[#allocation10 + $0xa8] sm:$0xff] }
 0x1b6   : > { %v513_v9 = vsel %vm1755_vm6, %v511_v0, 0.0 }
 0x1b7   : > { %v530_v16 = vmul.f32 %v529_v2, %v513_v9  ;;  %v588_v2 = vld [vmem:[#allocation10 + $0xc0] sm:$0xff] }
 0x1b8   : > { %v592_v9 = vld [vmem:[#allocation10 + $0xe0] sm:$0xff] }
 0x222   : > { %v458_v28 = vpop.permute.xlu0 %457 }
 0x223   : > { %v459_v31 = vsel %vm456_vm2, %v458_v28, 0.0  ;;  %v571_v28 = vld [vmem:[#allocation10 + $0x38] sm:$0xff] }
 0x224   : > { %v470_v36 = vrot.slane %v459_v31, 7  ;;  %v493_v52 = vmul.f32 %v492_v35, %v459_v31  ;;  %v1072_v31 = vpack.c.bf16 %v566_v26, %v564_v25  ;;  %v1074_v32 = vpack.c.bf16 %v571_v28, %v569_v8  ;;  %v570_v35 = vld [vmem:[#allocation10 + $0x30] sm:$0xff] }
 0x226   : > { %v473_v41 = vsel %vm472_vm1, 0.0, %v470_v36  ;;  %v474_v42 = vsel %vm472_vm1, %v470_v36, 0.0  ;;  %v462_v45 = vpop.permute.xlu0 %461  ;;  %v573_v36 = vld [vmem:[#allocation10 + $0x48] sm:$0xff] }
 0x227   : > { %v475_v46 = vsel %vm1743_vm4, %v473_v41, 0.0  ;;  %v479_v47 = vrot.slane %v473_v41, 2  ;;  %v480_v48 = vrot.slane %v474_v42, 2  ;;  %v463_v50 = vsel %vm460_vm3, %v462_v45, 0.0  ;;  %v574_v41 = vld [vmem:[#allocation10 + $0x50] sm:$0xff]  ;;  %v577_v42 = vld [vmem:[#allocation10 + $0x68] sm:$0xff] }
 0x228   : > { %v488_v51 = vmul.f32 %v487_v34, %v475_v46  ;;  %v533_v49 = vrot.slane %v463_v50, 7  ;;  %v555_v23 = vmul.f32 %v554_v14, %v463_v50  ;;  %v568_v34 = vld [vmem:[#allocation10 + $0x20] sm:$0xff]  ;;  %v1080_v45 = vpack.c.bf16 %v574_v41, %v572_v40  ;;  %v581_v50 = vld [vmem:[#allocation10 + $0x88] sm:$0xff] }
 0x229   : > { %v481_v56 = vsel %vm478_vm5, %v479_v47, %v480_v48  ;;  %v1076_v33 = vpack.c.bf16 %v570_v35, %v568_v34  ;;  %v1082_v46 = vpack.c.bf16 %v579_v44, %v577_v42  ;;  %v576_v47 = vld [vmem:[#allocation10 + $0x60] sm:$0xff]  ;;  %v578_v48 = vld [vmem:[#allocation10 + $0x70] sm:$0xff]  ;;  %v775_v14 = vrot.slane %v1725_v53, %v1749_v39 }
 0x22a   : > { %v483_v58 = vsel %vm1755_vm6, %v481_v56, 0.0  ;;  %v494_v59 = vadd.f32 %v493_v52, %v488_v51  ;;  %v535_v60 = vsel %vm472_vm1, 0.0, %v533_v49  ;;  %v536_v61 = vsel %vm472_vm1, %v533_v49, 0.0  ;;  %v583_v51 = vld [vmem:[#allocation10 + $0x98] sm:$0xff] }
 0x22b   : > { %v499_v63 = vmul.f32 %v498_v38, %v483_v58  ;;  %v540_v6 = vrot.slane %v535_v60, 2  ;;  %v541_v7 = vrot.slane %v536_v61, 2  ;;  %v537_v13 = vsel %vm1743_vm4, %v535_v60, 0.0  ;;  %v587_v56 = vld [vmem:[#allocation10 + $0xb8] sm:$0xff]  ;;  %v586_v60 = vld [vmem:[#allocation10 + $0xb0] sm:$0xff]  ;;  %v589_v61 = vld [vmem:[#allocation10 + $0xc8] sm:$0xff] }
 0x22c   : > { %v549_v19 = vmul.f32 %v548_v12, %v537_v13  ;;  %v1078_v38 = vpack.c.bf16 %v575_v37, %v573_v36  ;;  %v1084_v52 = vpack.c.bf16 %v578_v48, %v576_v47  ;;  %v1086_v49 = vpack.c.bf16 %v583_v51, %v581_v50  ;;  %v563_v12 = vld [vmem:[%s1693_s10] sm:$0xff]  ;;  %s1345_s10 = sshll.u32 %s1437_s18, 4  ;;  %s1346_s10 = int_to_ptr.vmem [resolvable:$false] %s1345_s10 }
 0x22d   : > { %v500_v4 = vadd.f32 %v499_v63, %v494_v59  ;;  %v542_v17 = vsel %vm478_vm5, %v540_v6, %v541_v7  ;;  %v1090_v58 = vpack.c.bf16 %v587_v56, %v585_v55  ;;  %v584_v59 = vld [vmem:[#allocation10 + $0xa0] sm:$0xff]  ;;  %v1094_v0 = vpack.c.bf16 %v591_v62, %v589_v61  ;;  %s1347_s16 = scalar_lea.vmem %s1346_s10, 512  ;;  %p1348_p0 = scmp.lt.s32.totalorder %s1796_s11, %s1346_s10 }
 0x22e   : > { %v544_v21 = vsel %vm1755_vm6, %v542_v17, 0.0  ;;  %v1092_v63 = vpack.c.bf16 %v586_v60, %v584_v59  ;;  %v1096_v6 = vpack.c.bf16 %v590_v3, %v588_v2  ;;  %v778_v13 = vsub.s32 3, %v1717_v43  ;;  %p1349_p8 = scmp.lt.s32.totalorder %s1347_s16, %s1341_s4 }
 0x22f   : > { %v519_v10 = vadd.f32 %v518_v5, %v500_v4  ;;  %v561_v30 = vmul.f32 %v560_v20, %v544_v21  ;;  %v593_v4 = vld [vmem:[#allocation10 + $0xe8] sm:$0xff]  ;;  %v595_v5 = vld [vmem:[#allocation10 + $0xf8] sm:$0xff]  ;;  %v785_v17 = vrot.slane %v775_v14, %v1749_v39 }
 0x230   : > { %v1098_v7 = vpack.c.bf16 %v595_v5, %v593_v4  ;;  %p1350_p6 = por %p1349_p8, %p1348_p0 }
 0x231   : > { %v525_v15 = vadd.f32 %v524_v11, %v519_v10  ;;  %v594_v10 = vld [vmem:[#allocation10 + $0xf0] sm:$0xff] }
 0x232   : > { %v1100_v11 = vpack.c.bf16 %v594_v10, %v592_v9  ;;  %p1351_p10 = pnand %p1350_p6, %p1344_p4 }
 0x233   : > { %v531_v18 = vadd.f32 %v530_v16, %v525_v15  ;;  %v779_v15 = vrot.slane %v1725_v53, %v778_v13  ;;  %v792_v16 = vadd.s32 128, %v1733_v24 }
 0x235   : > { %v550_v22 = vadd.f32 %v549_v19, %v531_v18  ;;  %v793_v18 = vand.u32 1, %v1733_v24  ;;  %v789_v19 = vrot.slane %v779_v15, %v1749_v39  ;;  %v794_v20 = vand.u32 1, %v792_v16 }
 0x237   : > { %v556_v29 = vadd.f32 %v555_v23, %v550_v22  ;;  %vm795_vm7 = vcmp.eq.s32.totalorder %v793_v18, 1  ;;  %vm796_vm8 = vcmp.eq.s32.totalorder %v794_v20, 1 }
 0x239   : > { %v562_v27 = vadd.f32 %v561_v30, %v556_v29 }
 0x23b   : > { %694 = vmatmul.mubr.f32.vlgmr.msra.gmra.mrb[0].mxu1 %v562_v27 }
 0x23c   : > { %1073 = vmatpush1.bf16.msra.mxu1 %v1072_v31  ;;  %764 = vmatprep.mubr.f32.mxu1 %v1434_v1  ;;  %v582_v1 = vld [vmem:[#allocation10 + $0x90] sm:$0xff] }
 0x23d   : > { %1075 = vmatprep.subr.bf16.mxu1 %v1074_v32  ;;  %v1088_v57 = vpack.c.bf16 %v582_v1, %v580_v54 }
 0x240   : > { %1077 = vmatpush1.bf16.msra.mxu1 %v1076_v33 }
 0x241   : > { %1079 = vmatprep.subr.bf16.mxu1 %v1078_v38 }
 0x244   : > { %1081 = vmatpush1.bf16.msra.mxu1 %v1080_v45 }
 0x245   : > { %1083 = vmatprep.subr.bf16.mxu1 %v1082_v46 }
 0x248   : > { %1085 = vmatpush1.bf16.msra.mxu1 %v1084_v52 }
 0x249   : > { %1087 = vmatprep.subr.bf16.mxu1 %v1086_v49 }
 0x24c   : > { %1089 = vmatpush1.bf16.msra.mxu1 %v1088_v57 }
 0x24d   : > { %1091 = vmatprep.subr.bf16.mxu1 %v1090_v58 }
 0x250   : > { %1093 = vmatpush1.bf16.msra.mxu1 %v1092_v63 }
 0x251   : > { %1095 = vmatprep.subr.bf16.mxu1 %v1094_v0 }
 0x254   : > { %1097 = vmatpush1.bf16.msra.mxu1 %v1096_v6 }
 0x255   : > { %1099 = vmatprep.subr.bf16.mxu1 %v1098_v7 }
 0x258   : > { %1101 = vmatpush1.bf16.msra.mxu1 %v1100_v11 }
 0x25b   : > { %765 = vmatmul.mubr.f32.vlgmr.msra.gmra.mrb[0].mxu1 %v563_v12 }
 0x32e   : > { %v766_v21 = vpop.f32.mrb[0].mxu1 }
 0x32f   : > { %v790_v22 = vadd.f32 %v785_v17, %v766_v21  ;;  %v768_v23 = vpop.f32.mrb[1].mxu1 }
 0x330   : > { %v791_v43 = vadd.f32 %v789_v19, %v768_v23 }
 0x331   : > { %v797_v53 = vmax.f32 %v790_v22, 0.0 }
 0x332   : > { %v798_v25 = vmax.f32 %v791_v43, 0.0 }
 0x333   : > { %v799_v26 = vsel %vm795_vm7, %v797_v53, %v790_v22 }
 0x334   : > { %801 = vst [vmem:[%s346_s3] sm:$0xff] %v799_v26  ;;  %v800_v24 = vsel %vm796_vm8, %v798_v25, %v791_v43 }
 0x335   : > { %802 = vst [vmem:[%s346_s3 + $0x8] sm:$0xff] %v800_v24 }
 0x336   : > { %1354 = shalt.err (!%p1351_p10)
}
 0x337   : > { %s1355_s2 = scalar_lea.hbm %s1794_s12, 256  ;;  %s1359_s27 = scalar_lea.hbm %s1844_s6, 512 }
 0x338   : > { %p1356_p13 = scmp.ne.s32.totalorder %s1794_s12, %s1355_s2  ;;  %p1360_p9 = scmp.lt.u32.totalorder %s1794_s12, %s1844_s6 }
 0x339   : > { %p1361_p3 = scmp.lt.u32.totalorder %s1359_s27, %s1355_s2  ;;  %p1363_p12 = scmp.lt.u32.totalorder %s1355_s2, %s1794_s12 }
 0x33a   : > { %p1357_p5 = pnand %p1356_p13, %p1873_p2 }
 0x33b   : > { %p1362_p7 = por %p1361_p3, %p1360_p9 }
 0x33c   : > { %p1358_p11 = pneg %p1357_p5 }
 0x33d   : > { %p1364_p1 = por %p1363_p12, %p1362_p7 }
 0x33f   : > { %p1365_p4 = pnand %p1364_p1, %p1358_p11 }
 0x341   : > { %1368 = shalt.err (!%p1365_p4)
}
 0x342   : > { %1120 = dma.vmem_to_hbm [thread:$0]  (%p1873_p2), %s1796_s11, 256, %s1794_s12, %s804_s25  }
 0x343 PF: > { %s830_s8 = sand.u32 1, %s1407_s21   ;;  %p1874_p0 = scmp.ne.s32.totalorder %s1853_s28, 0 }
 0x344   : > { %p1875_p8 = scmp.ge.s32.totalorder %s1419_s24, 2  ;;  %s831_s15 = scalar_lea.sflag [#allocation4], %s830_s8 }
 0x346   : > { %p1140_p6 = pnand %p1875_p8, %p1874_p0 }
 0x348   : > { %1402 = dma.done.wait (!%p1140_p6), %s831_s15, 256  }
 0x349   : > { %1404 = vsyncadd (!%p1140_p6), %s831_s15, 4294967040  ;;  %p23_p10 = scmp.ge.s32.totalorder %s1601_s30, 4   ;;  %s1876_s21 = smov %s1411_s22 }
 0x34a   : > { %s1877_s22 = smov %s1415_s23  ;;  %s1878_s23 = smov %s1611_s13 }
 0x34b   : > { %s1879_s24 = smov %s1601_s30  ;;  %25 = sbr.rel (!%p23_p10) target bundleno = 12 (0xc), region = 115 }
 0x352   :  { %836 = vsyncpa [#allocation3], 1 }
 0x353   :  { %838 = vsyncpa [#allocation3 + $0x1], 1 }
 0x354   :  { %839 = vsyncpa [#allocation6], 1 }
 0x355   :  { %841 = vsyncpa [#allocation6 + $0x1], 1 }
 0x356   :  { %842 = vsyncpa [#allocation9], 1 }
 0x357   :  { %843 = vsyncpa [#allocation4], 1 }
 0x358   :  { %845 = vsyncpa [#allocation4 + $0x1], 1 }

</bundles_post_ra>
